<compile_context>
chip_gen: v7x
topology: tpu7x:2x2x1
jax: 0.10.0
libtpu: 0.0.40
codegen_flags: <defaults>
</compile_context>

<pallas_src>
import functools

import jax
import jax.numpy as jnp
from jax.experimental import pallas as pl
from jax.experimental.pallas import tpu as pltpu


def _additive_attn_kernel(q_ref, vals_ref, mask_ref, wq_ref, wv_ref, b_ref, v_ref,
                          combo_ref, scores_ref):
    # Block shapes (per grid step over batch tiles of size BB):
    #   q_ref      (1, BB, H)   query,  original (1, B, H) layout
    #   vals_ref   (T, BB, H)   values, original (T, B, H) layout
    #   mask_ref   (BB, 1, T)   mask,   original (B, 1, T) layout
    #   wq_ref     (H, H)       W[:, :H].T  (query half of the Linear)
    #   wv_ref     (H, H)       W[:, H:].T  (values half of the Linear)
    #   b_ref      (1, H)       bias
    #   v_ref      (1, H)       v.T
    #   combo_ref  (BB, H)
    #   scores_ref (BB, 1, T)   lane-dense scores output
    T, BB, H = vals_ref.shape

    vals = vals_ref[...]                                     # (T, BB, H)
    q = q_ref[0]                                             # (BB, H)

    # --- projections on the MXU ---------------------------------------------
    # W(cat(q, vals)) == q @ Wq.T + vals @ Wv.T + b.  The values half is a
    # single flat (T*BB, H) @ (H, H) matmul; with BB a multiple of 8 the
    # (T, BB, H) -> (T*BB, H) reshape is layout-preserving (free).
    proj_v = jnp.dot(vals.reshape(T * BB, H), wv_ref[...],
                     preferred_element_type=jnp.float32)     # (T*BB, H)
    proj_q = jnp.dot(q, wq_ref[...],
                     preferred_element_type=jnp.float32)     # (BB, H)
    energy = jnp.tanh(proj_v.reshape(T, BB, H) + proj_q[None, :, :] + b_ref[...])

    # --- scores ---------------------------------------------------------------
    # s[t, b] = v . energy[t, b, :]  (lane reduction over H)
    s_tb = jnp.sum(energy * v_ref[...], axis=-1)             # (T, BB)
    s_bt = s_tb.T                                            # (BB, T) lane dim = T
    s_bt = s_bt * mask_ref[...][:, 0, :]                     # apply mask
    denom = jnp.sum(s_bt, axis=-1, keepdims=True)            # (BB, 1) sum over T
    # TODO(synk): mirrors PyTorch's scores.div_(scores.sum(2)) — no guard for a
    # ~0 masked-score sum; the original module is equally fragile numerically.
    s_bt = s_bt * pl.reciprocal(denom, approx=True)          # normalise (EUP)

    # --- weighted sum over T (combo) ------------------------------------------
    # combo[b, :] = sum_t s[b, t] * vals[t, b, :] ; values are time-major, so a
    # broadcast multiply + reduce over the leading T axis is just T vreg FMAs.
    w_tb = s_bt.T                                            # (T, BB)
    combo = jnp.sum(w_tb[:, :, None] * vals, axis=0)         # (BB, H)

    combo_ref[...] = combo.astype(combo_ref.dtype)
    scores_ref[...] = s_bt[:, None, :].astype(scores_ref.dtype)


@functools.partial(jax.jit, static_argnames=("block_b",))
def additive_attention(mask, query, values, W_weight, W_bias, v_param, block_b=8):
    """mask (B,1,T), query (1,B,H), values (T,B,H) -> (combo (B,H), scores (B,1,T))."""
    T, B, H = values.shape

    # Batch tile: must divide B and be a multiple of 8 sublanes (or the full B).
    # For best MXU use pick block_b so block_b * T is ~128-512 rows while keeping
    # >= 2 grid steps (v7x has two TensorCores sharding the parallel axis).
    if B % block_b == 0 and block_b % 8 == 0:
        BB = block_b
    elif B % 8 == 0:
        BB = 8
    else:
        BB = B          # tiny / ragged batch -> single block over the full batch

    # Only the tiny parameter tensors are massaged in the wrapper; the big
    # activations (values / query / mask) go to the kernel in their original
    # layouts and are tiled by BlockSpec.
    wq_t = W_weight[:, :H].T                                  # (H, H) query half
    wv_t = W_weight[:, H:].T                                  # (H, H) values half
    b_row = W_bias.reshape(1, H)                              # (1, H)
    v_row = v_param.reshape(1, H)                             # (1, H) == v.T

    combo, scores = pl.pallas_call(
        _additive_attn_kernel,
        out_shape=(
            jax.ShapeDtypeStruct((B, H), jnp.float32),
            jax.ShapeDtypeStruct((B, 1, T), jnp.float32),
        ),
        grid_spec=pltpu.PrefetchScalarGridSpec(
            num_scalar_prefetch=0,
            grid=(B // BB,),
            in_specs=[
                pl.BlockSpec((1, BB, H), lambda b: (0, b, 0)),   # query  (1,B,H)
                pl.BlockSpec((T, BB, H), lambda b: (0, b, 0)),   # values (T,B,H)
                pl.BlockSpec((BB, 1, T), lambda b: (b, 0, 0)),   # mask   (B,1,T)
                pl.BlockSpec((H, H), lambda b: (0, 0)),          # Wq^T
                pl.BlockSpec((H, H), lambda b: (0, 0)),          # Wv^T
                pl.BlockSpec((1, H), lambda b: (0, 0)),          # bias
                pl.BlockSpec((1, H), lambda b: (0, 0)),          # v^T
            ],
            out_specs=[
                pl.BlockSpec((BB, H), lambda b: (b, 0)),         # combo  (B,H)
                pl.BlockSpec((BB, 1, T), lambda b: (b, 0, 0)),   # scores (B,1,T)
            ],
        ),
        compiler_params=pltpu.CompilerParams(
            dimension_semantics=("parallel",),
            vmem_limit_bytes=32 * 1024 * 1024,   # safe on v5e/v6e/v7x for these tiles
        ),
    )(query, values, mask, wq_t, wv_t, b_row, v_row)

    return combo, scores


def additive_attention_reference(mask, query, values, W_weight, W_bias, v_param):
    """Pure-JAX transcription of the PyTorch forward (for correctness check)."""
    T, B, H = values.shape
    q = jnp.broadcast_to(query, (T, B, H))
    feats = jnp.concatenate([q, values], axis=2)                    # (T, B, 2H)
    energy = jnp.tanh(
        jnp.einsum('tbk,hk->tbh', feats, W_weight,
                   precision=jax.lax.Precision.HIGHEST) + W_bias)   # (T, B, H)
    energy_p = jnp.transpose(energy, (1, 2, 0))                     # (B, H, T)
    vt = jnp.broadcast_to(v_param.T[None], (B, 1, H))               # (B, 1, H)
    scores = jnp.einsum('bih,bht->bit', vt, energy_p,
                        precision=jax.lax.Precision.HIGHEST)        # (B, 1, T)
    scores = scores * mask
    scores = scores / jnp.sum(scores, axis=2, keepdims=True)
    vals_p = jnp.transpose(values, (1, 0, 2))                       # (B, T, H)
    combo = jnp.einsum('bit,bth->bih', scores, vals_p,
                       precision=jax.lax.Precision.HIGHEST)[:, 0, :]
    return combo, scores


if __name__ == "__main__":
    T, B, H = 8, 16, 32
    key = jax.random.PRNGKey(0)
    k1, k2, k3, k4, k5 = jax.random.split(key, 5)

    # Deterministic parameter init (shapes from the module's __init__).
    # |v| >= 0 and positively-offset bias keep the scores.sum(2) normaliser in
    # the forward comfortably away from zero for this synthetic demo.
    W_weight = 0.05 * jax.random.normal(k1, (H, 2 * H), dtype=jnp.float32)  # Linear(2H -> H)
    W_bias = 0.5 + 0.02 * jax.random.normal(k2, (H,), dtype=jnp.float32)
    v_param = jnp.abs(0.1 * jax.random.normal(k3, (H, 1), dtype=jnp.float32))

    # Inputs: values (T,B,H), query (1,B,H), mask (B,1,T) (binary length mask).
    values = jax.random.normal(k4, (T, B, H), dtype=jnp.float32)
    query = jax.random.normal(k5, (1, B, H), dtype=jnp.float32)
    lengths = T - (jnp.arange(B) % 4)                                        # in {T..T-3}
    mask = (jnp.arange(T)[None, None, :] < lengths[:, None, None]).astype(jnp.float32)

    combo, scores = additive_attention(mask, query, values, W_weight, W_bias, v_param)
    jax.block_until_ready((combo, scores))

    combo_ref, scores_ref = additive_attention_reference(
        mask, query, values, W_weight, W_bias, v_param)

    assert combo.shape == (B, H) and scores.shape == (B, 1, T)
    # 5e-3 tolerance covers default-precision MXU matmuls + approx EUP reciprocal
    # vs. the Precision.HIGHEST / exact-divide reference.
    assert jnp.allclose(combo, combo_ref, atol=5e-3, rtol=5e-3), "combo mismatch"
    assert jnp.allclose(scores, scores_ref, atol=5e-3, rtol=5e-3), "scores mismatch"

    print("KERNEL_OK")
</pallas_src>

<mosaic_0001>
module attributes {stable_mosaic.version = 11 : i64} {
  func.func @_additive_attn_kernel(%arg0: i32, %arg1: memref<1x8x32xf32, #tpu.memory_space<vmem>>, %arg2: memref<8x8x32xf32, #tpu.memory_space<vmem>>, %arg3: memref<8x1x8xf32, #tpu.memory_space<vmem>>, %arg4: memref<32x32xf32, #tpu.memory_space<vmem>>, %arg5: memref<32x32xf32, #tpu.memory_space<vmem>>, %arg6: memref<1x32xf32, #tpu.memory_space<vmem>>, %arg7: memref<1x32xf32, #tpu.memory_space<vmem>>, %arg8: memref<8x32xf32, #tpu.memory_space<vmem>>, %arg9: memref<8x1x8xf32, #tpu.memory_space<vmem>>) attributes {dimension_semantics = [#tpu.dimension_semantics<parallel>], iteration_bounds = array<i64: 2>, scalar_prefetch = 0 : i64, scratch_operands = 0 : i64, tpu.core_type = #tpu.core_type<tc>, window_params = [{transform_indices = @transform_0, window_bounds = array<i64: 1, 8, 32>}, {transform_indices = @transform_1, window_bounds = array<i64: 8, 8, 32>}, {transform_indices = @transform_2, window_bounds = array<i64: 8, 1, 8>}, {pipeline_mode = #tpu.pipeline_mode<synchronous>, transform_indices = @transform_3, window_bounds = array<i64: 32, 32>}, {pipeline_mode = #tpu.pipeline_mode<synchronous>, transform_indices = @transform_4, window_bounds = array<i64: 32, 32>}, {pipeline_mode = #tpu.pipeline_mode<synchronous>, transform_indices = @transform_5, window_bounds = array<i64: 1, 32>}, {pipeline_mode = #tpu.pipeline_mode<synchronous>, transform_indices = @transform_6, window_bounds = array<i64: 1, 32>}, {transform_indices = @transform_7, window_bounds = array<i64: 8, 32>}, {transform_indices = @transform_8, window_bounds = array<i64: 8, 1, 8>}]} {
    %c0 = arith.constant 0 : index
    %c0_0 = arith.constant 0 : index
    %c0_1 = arith.constant 0 : index
    %0 = vector.load %arg2[%c0, %c0_0, %c0_1] : memref<8x8x32xf32, #tpu.memory_space<vmem>>, vector<8x8x32xf32>
    %c0_2 = arith.constant 0 : index
    %c0_3 = arith.constant 0 : index
    %c0_4 = arith.constant 0 : index
    %1 = vector.load %arg1[%c0_2, %c0_3, %c0_4] : memref<1x8x32xf32, #tpu.memory_space<vmem>>, vector<1x8x32xf32>
    %2 = vector.shape_cast %1 : vector<1x8x32xf32> to vector<8x32xf32>
    %3 = vector.shape_cast %0 : vector<8x8x32xf32> to vector<64x32xf32>
    %c0_5 = arith.constant 0 : index
    %c0_6 = arith.constant 0 : index
    %4 = vector.load %arg5[%c0_5, %c0_6] : memref<32x32xf32, #tpu.memory_space<vmem>>, vector<32x32xf32>
    %cst = arith.constant dense<0.000000e+00> : vector<64x32xf32>
    %5 = tpu.matmul %3, %4, %cst {dimension_numbers = #tpu.dot_dimension_numbers<[1], [0], [0], [1], [0, 0, 1, 1], [], []>} : vector<64x32xf32>, vector<32x32xf32>, vector<64x32xf32> -> vector<64x32xf32>
    %c0_7 = arith.constant 0 : index
    %c0_8 = arith.constant 0 : index
    %6 = vector.load %arg4[%c0_7, %c0_8] : memref<32x32xf32, #tpu.memory_space<vmem>>, vector<32x32xf32>
    %cst_9 = arith.constant dense<0.000000e+00> : vector<8x32xf32>
    %7 = tpu.matmul %2, %6, %cst_9 {dimension_numbers = #tpu.dot_dimension_numbers<[1], [0], [0], [1], [0, 0, 1, 1], [], []>} : vector<8x32xf32>, vector<32x32xf32>, vector<8x32xf32> -> vector<8x32xf32>
    %8 = vector.shape_cast %5 : vector<64x32xf32> to vector<8x8x32xf32>
    %9 = vector.shape_cast %7 : vector<8x32xf32> to vector<1x8x32xf32>
    %10 = vector.broadcast %9 : vector<1x8x32xf32> to vector<8x8x32xf32>
    %11 = arith.addf %8, %10 : vector<8x8x32xf32>
    %c0_10 = arith.constant 0 : index
    %c0_11 = arith.constant 0 : index
    %12 = vector.load %arg6[%c0_10, %c0_11] : memref<1x32xf32, #tpu.memory_space<vmem>>, vector<1x32xf32>
    %13 = vector.shape_cast %12 : vector<1x32xf32> to vector<1x1x32xf32>
    %14 = vector.broadcast %13 : vector<1x1x32xf32> to vector<8x8x32xf32>
    %15 = arith.addf %11, %14 : vector<8x8x32xf32>
    %16 = math.tanh %15 : vector<8x8x32xf32>
    %c0_12 = arith.constant 0 : index
    %c0_13 = arith.constant 0 : index
    %17 = vector.load %arg7[%c0_12, %c0_13] : memref<1x32xf32, #tpu.memory_space<vmem>>, vector<1x32xf32>
    %18 = vector.shape_cast %17 : vector<1x32xf32> to vector<1x1x32xf32>
    %19 = vector.broadcast %18 : vector<1x1x32xf32> to vector<8x8x32xf32>
    %20 = arith.mulf %16, %19 : vector<8x8x32xf32>
    %cst_14 = arith.constant dense<0.000000e+00> : vector<8x8xf32>
    %21 = vector.multi_reduction <add>, %20, %cst_14 [2] : vector<8x8x32xf32> to vector<8x8xf32>
    %22 = tpu.transpose %21, [1, 0] : vector<8x8xf32> -> vector<8x8xf32>
    %c0_15 = arith.constant 0 : index
    %c0_16 = arith.constant 0 : index
    %c0_17 = arith.constant 0 : index
    %23 = vector.load %arg3[%c0_15, %c0_16, %c0_17] : memref<8x1x8xf32, #tpu.memory_space<vmem>>, vector<8x1x8xf32>
    %24 = vector.shape_cast %23 : vector<8x1x8xf32> to vector<8x8xf32>
    %25 = arith.mulf %22, %24 : vector<8x8xf32>
    %cst_18 = arith.constant dense<0.000000e+00> : vector<8xf32>
    %26 = vector.multi_reduction <add>, %25, %cst_18 [1] : vector<8x8xf32> to vector<8xf32>
    %27 = vector.shape_cast %26 : vector<8xf32> to vector<8x1xf32>
    %28 = tpu.reciprocal %27 {approx = true} : vector<8x1xf32> -> vector<8x1xf32>
    %29 = vector.broadcast %28 : vector<8x1xf32> to vector<8x8xf32>
    %30 = arith.mulf %25, %29 : vector<8x8xf32>
    %31 = tpu.transpose %30, [1, 0] : vector<8x8xf32> -> vector<8x8xf32>
    %32 = vector.shape_cast %31 : vector<8x8xf32> to vector<8x8x1xf32>
    %33 = vector.broadcast %32 : vector<8x8x1xf32> to vector<8x8x32xf32>
    %34 = arith.mulf %33, %0 : vector<8x8x32xf32>
    %cst_19 = arith.constant dense<0.000000e+00> : vector<8x32xf32>
    %35 = vector.multi_reduction <add>, %34, %cst_19 [0] : vector<8x8x32xf32> to vector<8x32xf32>
    %c0_20 = arith.constant 0 : index
    %c0_21 = arith.constant 0 : index
    %36 = vector.load %arg8[%c0_20, %c0_21] : memref<8x32xf32, #tpu.memory_space<vmem>>, vector<8x32xf32>
    tpu.vector_store %arg8[%c0_20, %c0_21], %35 {strides = array<i32>} : memref<8x32xf32, #tpu.memory_space<vmem>>, vector<8x32xf32>,
    %37 = vector.shape_cast %30 : vector<8x8xf32> to vector<8x1x8xf32>
    %c0_22 = arith.constant 0 : index
    %c0_23 = arith.constant 0 : index
    %c0_24 = arith.constant 0 : index
    %38 = vector.load %arg9[%c0_22, %c0_23, %c0_24] : memref<8x1x8xf32, #tpu.memory_space<vmem>>, vector<8x1x8xf32>
    tpu.vector_store %arg9[%c0_22, %c0_23, %c0_24], %37 {strides = array<i32>} : memref<8x1x8xf32, #tpu.memory_space<vmem>>, vector<8x1x8xf32>,
    return
  }
  func.func @transform_0(%arg0: i32) -> (i32, i32, i32) {
    %c0_i32 = arith.constant 0 : i32
    %c0_i32_0 = arith.constant 0 : i32
    %c0_i32_1 = arith.constant 0 : i32
    return %c0_i32, %arg0, %c0_i32_0 : i32, i32, i32
  }
  func.func @transform_1(%arg0: i32) -> (i32, i32, i32) {
    %c0_i32 = arith.constant 0 : i32
    %c0_i32_0 = arith.constant 0 : i32
    %c0_i32_1 = arith.constant 0 : i32
    return %c0_i32, %arg0, %c0_i32_0 : i32, i32, i32
  }
  func.func @transform_2(%arg0: i32) -> (i32, i32, i32) {
    %c0_i32 = arith.constant 0 : i32
    %c0_i32_0 = arith.constant 0 : i32
    %c0_i32_1 = arith.constant 0 : i32
    return %arg0, %c0_i32, %c0_i32_0 : i32, i32, i32
  }
  func.func @transform_3(%arg0: i32) -> (i32, i32) {
    %c0_i32 = arith.constant 0 : i32
    %c0_i32_0 = arith.constant 0 : i32
    %c0_i32_1 = arith.constant 0 : i32
    return %c0_i32, %c0_i32_0 : i32, i32
  }
  func.func @transform_4(%arg0: i32) -> (i32, i32) {
    %c0_i32 = arith.constant 0 : i32
    %c0_i32_0 = arith.constant 0 : i32
    %c0_i32_1 = arith.constant 0 : i32
    return %c0_i32, %c0_i32_0 : i32, i32
  }
  func.func @transform_5(%arg0: i32) -> (i32, i32) {
    %c0_i32 = arith.constant 0 : i32
    %c0_i32_0 = arith.constant 0 : i32
    %c0_i32_1 = arith.constant 0 : i32
    return %c0_i32, %c0_i32_0 : i32, i32
  }
  func.func @transform_6(%arg0: i32) -> (i32, i32) {
    %c0_i32 = arith.constant 0 : i32
    %c0_i32_0 = arith.constant 0 : i32
    %c0_i32_1 = arith.constant 0 : i32
    return %c0_i32, %c0_i32_0 : i32, i32
  }
  func.func @transform_7(%arg0: i32) -> (i32, i32) {
    %c0_i32 = arith.constant 0 : i32
    %c0_i32_0 = arith.constant 0 : i32
    return %arg0, %c0_i32 : i32, i32
  }
  func.func @transform_8(%arg0: i32) -> (i32, i32, i32) {
    %c0_i32 = arith.constant 0 : i32
    %c0_i32_0 = arith.constant 0 : i32
    %c0_i32_1 = arith.constant 0 : i32
    return %arg0, %c0_i32, %c0_i32_0 : i32, i32, i32
  }
}

</mosaic_0001>

<bundles_post_ra>
// kernel: additive_attention.1
= control target key start
LH: loop header
LB: loop body
LE: loop exit
PB: predicated region body
PF: predicated region fallthrough
CT: control target
= control target key end

     0   :  { %14 = vsyncpa [#allocation4], 0  ;;  %s1670_s0 = inlined_call_operand.vmem [shape: f32[1,16,32], index: 0, kind: input, shape index: {}]   ;;  %s1671_s1 = inlined_call_operand.vmem [shape: f32[8,16,32], index: 1, kind: input, shape index: {}]   ;;  %s1672_s2 = inlined_call_operand.vmem [shape: f32[16,1,8], index: 2, kind: input, shape index: {}]   ;;  %s1673_s3 = inlined_call_operand.vmem [shape: f32[32,32], index: 3, kind: input, shape index: {}]   ;;  %s1674_s4 = inlined_call_operand.vmem [shape: f32[32,32], index: 4, kind: input, shape index: {}]   ;;  %s1675_s5 = inlined_call_operand.vmem [shape: f32[1,32], index: 5, kind: input, shape index: {}]   ;;  %s1676_s6 = inlined_call_operand.vmem [shape: f32[1,32], index: 6, kind: input, shape index: {}]   ;;  %s1677_s7 = inlined_call_operand.hbm [shape: f32[16,32], index: 7, kind: output, shape index: {0}]   ;;  %s1678_s8 = inlined_call_operand.vmem [shape: f32[16,1,8], index: 8, kind: output, shape index: {1}]  }
   0x1   :  { %16 = vsyncpa [#allocation4 + $0x1], 0  ;;  %s1436_s27 = smov 0   ;;  %s1438_s28 = smov 0  }
   0x2   :  { %s1440_s29 = smov 0   ;;  %s1442_s30 = smov 0  }
   0x3 LB: > { %s1457_s9 = sadd.s32 4294967295, %s1384_s30   ;;  %s1173_s10 = sadd.s32 4294967294, %s1384_s30   ;;  %s1384_s30 = sphi %s1442_s30, %s1684_s30   ;;  %s1380_s29 = sphi %s1440_s29, %s1683_s29   ;;  %s1376_s28 = sphi %s1438_s28, %s1682_s28   ;;  %s1372_s27 = sphi %s1436_s27, %s1681_s27  }
   0x4   : > { %s1461_s11 = sadd.s32 1, %s1384_s30   ;;  %s55_s12 = sadd.s32 1, %s1380_s29 }
   0x5   : > { %s52_s13 = ssub.s32 %s1384_s30, %s1461_s11  ;;  %p62_p0 = scmp.ne.s32.totalorder %s1380_s29, %s1376_s28 }
   0x6   : > { %p53_p1 = scmp.eq.s32.totalorder %s52_s13, 0  ;;  %p63_p2 = scmp.eq.s32.totalorder %s1384_s30, 0 }
   0x7   : > { %p202_p3 = scmp.eq.s32.totalorder %s1457_s9, 1  ;;  %p207_p4 = scmp.ne.s32.totalorder %s1376_s28, %s1372_s27 }
   0x8   : > { %s1473_s14 = scalar_select %p53_p1, %s1380_s29, %s55_s12  }
   0x9   : > { %p64_p5 = por %p63_p2, %p62_p0  ;;  %p1475_p6 = por %p202_p3, %p62_p0 }
   0xa   : > { %p208_p7 = scmp.eq.s32.totalorder %s1173_s10, 1  ;;  %p1175_p9 = scmp.ge.s32.totalorder %s1384_s30, 2 }
   0xc   : > { %p1479_p8 = por %p208_p7, %p207_p4  ;;  %262 = sbr.rel (%p1175_p9) target bundleno = 27 (0x1b), region = 32 }
  0x13   : > { %272 = sbr.rel (!%p64_p5) target bundleno = 27 (0x1b), region = 40  ;;  %s274_s17 = sand.u32 (%p64_p5), 1, %s1380_s29  }
  0x14   : > { %s1177_s18 = sshll.u32 (%p64_p5), %s1384_s30, 3  ;;  %s1176_s19 = sshll.u32 (%p64_p5), %s274_s17, 6 }
  0x15   : > { %s278_s22 = scalar_lea.vmem (%p64_p5), %s1671_s1, %s1177_s18  ;;  %s276_s23 = scalar_lea.vmem (%p64_p5), [#allocation2], %s1176_s19 }
  0x16   : > { %v320_v0 = vld [vmem:[%s278_s22] sm:$0xff] (%p64_p5)  ;;  %v322_v1 = vld [vmem:[%s278_s22 + $0x10] sm:$0xff] (%p64_p5) }
  0x17   : > { %v324_v2 = vld [vmem:[%s278_s22 + $0x20] sm:$0xff] (%p64_p5)  ;;  %321 = vst [vmem:[%s276_s23] sm:$0xff] (%p64_p5), %v320_v0  ;;  %323 = vst [vmem:[%s276_s23 + $0x8] sm:$0xff] (%p64_p5), %v322_v1  ;;  %v326_v3 = vld [vmem:[%s278_s22 + $0x30] sm:$0xff] (%p64_p5) }
  0x18   : > { %325 = vst [vmem:[%s276_s23 + $0x10] sm:$0xff] (%p64_p5), %v324_v2  ;;  %v328_v4 = vld [vmem:[%s278_s22 + $0x40] sm:$0xff] (%p64_p5)  ;;  %v330_v5 = vld [vmem:[%s278_s22 + $0x50] sm:$0xff] (%p64_p5)  ;;  %327 = vst [vmem:[%s276_s23 + $0x18] sm:$0xff] (%p64_p5), %v326_v3 }
  0x19   : > { %329 = vst [vmem:[%s276_s23 + $0x20] sm:$0xff] (%p64_p5), %v328_v4  ;;  %331 = vst [vmem:[%s276_s23 + $0x28] sm:$0xff] (%p64_p5), %v330_v5  ;;  %v332_v6 = vld [vmem:[%s278_s22 + $0x60] sm:$0xff] (%p64_p5)  ;;  %v334_v7 = vld [vmem:[%s278_s22 + $0x70] sm:$0xff] (%p64_p5) }
  0x1a   : > { %333 = vst [vmem:[%s276_s23 + $0x30] sm:$0xff] %v332_v6  ;;  %335 = vst [vmem:[%s276_s23 + $0x38] sm:$0xff] %v334_v7 }
  0x1b PF: > { %p1178_p10 = scmp.ge.s32.totalorder %s1384_s30, 1  ;;  %p348_p11 = scmp.lt.s32.totalorder %s1384_s30, 3 }
  0x1d   : > { %p349_p12 = pnand %p1178_p10, %p348_p11 }
  0x1e   : > { %v423_v8 = vld [vmem:[%s1674_s4] sm:$0xff] (!%p349_p12)  ;;  %v424_v9 = vld [vmem:[%s1674_s4 + $0x8] sm:$0xff] (!%p349_p12)  ;;  %s1503_s17 = sand.u32 (!%p349_p12), 1, %s1376_s28   ;;  %v1386_v12 = vmov (!%p349_p12), 0.0|0.0   ;;  %v425_v14 = vld [vmem:[%s1674_s4 + $0x10] sm:$0xff] (!%p349_p12)  ;;  %vm1387_vm0 = vmmov (!%p349_p12), 0  }
  0x1f   : > { %352 = sbr.rel (%p349_p12) target bundleno = 998 (0x3e6), region = 82  ;;  %v557_v10 = vld [vmem:[%s1673_s3] sm:$0xff] (!%p349_p12)  ;;  %v1247_v11 = vpack.c.bf16 (!%p349_p12), %v424_v9, %v423_v8  ;;  %1255 = vmatprep.subr.bf16.mxu1 (!%p349_p12), %v1386_v12  ;;  %v558_v13 = vld [vmem:[%s1673_s3 + $0x8] sm:$0xff] (!%p349_p12)  ;;  %v426_v15 = vld [vmem:[%s1674_s4 + $0x18] sm:$0xff] (!%p349_p12)  ;;  %s1179_s24 = sshll.u32 (!%p349_p12), %s1503_s17, 6  ;;  %v1388_v20 = vmov (!%p349_p12), 0.0  }
  0x20   : > { %v1256_v16 = vpack.c.bf16 (!%p349_p12), %v558_v13, %v557_v10  ;;  %v1251_v17 = vpack.c.bf16 (!%p349_p12), %v426_v15, %v425_v14  ;;  %v559_v18 = vld [vmem:[%s1673_s3 + $0x10] sm:$0xff] (!%p349_p12)  ;;  %v560_v19 = vld [vmem:[%s1673_s3 + $0x18] sm:$0xff] (!%p349_p12)  ;;  %1244 = vmatprep.mubr.msk.f32.mxu1 (!%p349_p12), %vm1387_vm0, %v1388_v20  ;;  %p400_p13 = scmp.lt.s32.totalorder (!%p349_p12), %s1457_s9, 1  ;;  %s357_s13 = scalar_lea.vmem (!%p349_p12), [#allocation2], %s1179_s24  ;;  %vm427_vm1 = vcmask (!%p349_p12), 261120   ;;  %vm746_vm2 = vcmask (!%p349_p12), 1041409  }
  0x21   : > { %1248 = vmatprep.subr.bf16.mxu0 (!%p349_p12), %v1247_v11  ;;  %v1522_v21 = vld [vmem:[%s357_s13] sm:$0xff] (!%p349_p12)  ;;  %v1259_v22 = vpack.c.bf16 (!%p349_p12), %v560_v19, %v559_v18  ;;  %v1530_v23 = vld [vmem:[%s357_s13 + $0x8] sm:$0xff] (!%p349_p12)  ;;  %v1532_v25 = vld [vmem:[%s357_s13 + $0x10] sm:$0xff] (!%p349_p12)  ;;  %v712_v19 = vlaneseq (!%p349_p12)  ;;  %vm748_vm3 = vcmask (!%p349_p12), 1042434   ;;  %vm750_vm4 = vcmask (!%p349_p12), 1043459   ;;  %s1182_s10 = sshll.u32 (!%p349_p12), %s1457_s9, 3 }
  0x22   : > { %1250 = vmatpush3.bf16.msra.mxu0 (!%p349_p12), %v1247_v11  ;;  %1257 = vmatpush3.bf16.msra.mxu1 (!%p349_p12), %v1256_v16  ;;  %v1539_v26 = vld [vmem:[%s357_s13 + $0x18] sm:$0xff] (!%p349_p12)  ;;  %v1541_v27 = vld [vmem:[%s357_s13 + $0x20] sm:$0xff] (!%p349_p12)  ;;  %v1547_v28 = vld [vmem:[%s357_s13 + $0x28] sm:$0xff] (!%p349_p12)  ;;  %vm752_vm5 = vcmask (!%p349_p12), 1044484   ;;  %vm754_vm6 = vcmask (!%p349_p12), 1045509   ;;  %vm756_vm7 = vcmask (!%p349_p12), 1046534  }
  0x23   : > { %1252 = vmatprep.subr.bf16.mxu0 (!%p349_p12), %v1251_v17  ;;  %1258 = vmatprep.subr.bf16.mxu1 (!%p349_p12), %v1386_v12  ;;  %v1549_v29 = vld [vmem:[%s357_s13 + $0x30] sm:$0xff] (!%p349_p12)  ;;  %v1555_v30 = vld [vmem:[%s357_s13 + $0x38] sm:$0xff] (!%p349_p12)  ;;  %v1193_v33 = vld [vmem:[%s1675_s5] ss:$0 sm:$0xff] (!%p349_p12)  ;;  %v713_v20 = vand.u32 (!%p349_p12), 127, %v712_v19  ;;  %vm758_vm8 = vcmask (!%p349_p12), 1047559  }
  0x24   : > { %1224 = vmatprep.mubr.msk.f32.mxu0 (!%p349_p12), %vm427_vm1, %v1522_v21  ;;  %v1194_v55 = vld [vmem:[%s1676_s6] ss:$0 sm:$0xff] (!%p349_p12)  ;;  %p405_p0 = scmp.lt.s32.totalorder (!%p349_p12), %s1182_s10, 15  ;;  %vm860_vm9 = vcmask (!%p349_p12), 64512   ;;  %vm1036_vm10 = vcmask (!%p349_p12), 57344   ;;  %s1196_s23 = sshll.u32 (!%p349_p12), %s1457_s9, 7 }
  0x25   : > { %s1625_s12 = scalar_lea.hbm (!%p349_p12), %s1677_s7, %s1196_s23  ;;  %s1046_s13 = scalar_lea.sflag (!%p349_p12), [#allocation4], %s1503_s17 }
  0x26   : > { %s401_s18 = scalar_select %p400_p13, %s1457_s9, 1  ;;  %1254 = vmatpush3.bf16.msra.mxu0 %v1251_v17  ;;  %1260 = vmatpush3.bf16.msra.mxu1 %v1259_v22  ;;  %v1573_v22 = vshrl.u32 %v712_v19, 7 }
  0x27   : > { %s1686_s10 = smov (!%p405_p0, %s1182_s10), 15 }
  0x28   : > { %s1181_s19 = sshll.u32 %s401_s18, 3  ;;  %s407_s18 = scalar_lea.vmem %s1672_s2, %s1686_s10 }
  0x29   : > { %s403_s22 = scalar_lea.vmem %s1670_s0, %s1181_s19  ;;  %1225 = vmatmul.mubr.msk.f32.vlgmr.msra.gmra.mrb[0].mxu0 %vm427_vm1, %v1530_v23  ;;  %s412_s21 = scalar_lea.vmem %s1678_s8, %s1686_s10 }
  0x2a   : > { %v422_v24 = vld [vmem:[%s403_s22] sm:$0xff]  ;;  %1227 = vmatprep.mubr.msk.f32.mxu0 %vm427_vm1, %v1532_v25  ;;  %s1180_s22 = sshll.u32 %s1503_s17, 3 }
  0x2b   : > { %1245 = vmatmul.mubr.msk.f32.vlgmr.msra.gmra.mrb[0].mxu1 %vm427_vm1, %v422_v24  ;;  %s393_s24 = scalar_lea.vmem [#allocation3], %s1180_s22 }
  0x2c   : > { %s1063_s25 = sshll.u32 %s393_s24, 4  ;;  %s1627_s25 = int_to_ptr.vmem [resolvable:$true] %s1063_s25 }
  0x2d   : > { %1228 = vmatmul.mubr.msk.f32.gmra.mrb[2].mxu0 %vm427_vm1, %v1539_v26  ;;  %s1322_s9 = scalar_lea.vmem %s1627_s25, 128 }
  0x2e   : > { %1230 = vmatprep.mubr.msk.f32.mxu0 %vm427_vm1, %v1541_v27  ;;  %p1323_p1 = scmp.ne.s32.totalorder %s1627_s25, %s1322_s9 }
  0x30   : > { %p1324_p2 = pnand %p1323_p1, %p1475_p6 }
  0x31   : > { %1231 = vmatmul.mubr.msk.f32.gmra.mrb[4].mxu0 %vm427_vm1, %v1547_v28 }
  0x32   : > { %1233 = vmatprep.mubr.msk.f32.mxu0 %vm427_vm1, %v1549_v29  ;;  %p1325_p3 = pneg %p1324_p2 }
  0x35   : > { %1234 = vmatmul.mubr.msk.f32.gmra.mrb[6].mxu0 %vm427_vm1, %v1555_v30 }
  0xfc   : > { %v1226_v31 = vpop.f32.mrb[0].mxu0 }
  0xfd   : > { %v518_v34 = vpop.f32.mrb[1].mxu0 }
  0xfe   : > { %v630_v32 = vpop.f32.mrb[0].mxu1 }
  0xff   : > { %v1246_v35 = vpop.f32.mrb[1].mxu1  ;;  %v635_v36 = vadd.f32 %v1226_v31, %v630_v32  ;;  %v634_v37 = vadd.f32 %v630_v32, %v518_v34  ;;  %v716_v31 = vsub.s32 %v713_v20, %v1573_v22 }
 0x100   : > { %v1229_v40 = vpop.f32.mrb[2].mxu0 }
 0x101   : > { %v650_v38 = vadd.f32 %v1193_v33, %v635_v36  ;;  %v649_v39 = vadd.f32 %v1193_v33, %v634_v37  ;;  %v637_v41 = vadd.f32 %v1229_v40, %v630_v32  ;;  %v528_v42 = vpop.f32.mrb[3].mxu0 }
 0x102   : > { %v636_v43 = vadd.f32 %v630_v32, %v528_v42 }
 0x103   : > { %1304 = vtanh.f32 %v650_v38  ;;  %v652_v44 = vadd.f32 %v1193_v33, %v637_v41 }
 0x104   : > { %1306 = vtanh.f32 %v649_v39  ;;  %v651_v45 = vadd.f32 %v1193_v33, %v636_v43  ;;  %v1232_v46 = vpop.f32.mrb[4].mxu0 }
 0x105   : > { %1308 = vtanh.f32 %v652_v44  ;;  %v639_v47 = vadd.f32 %v1232_v46, %v630_v32  ;;  %v538_v48 = vpop.f32.mrb[5].mxu0 }
 0x106   : > { %1310 = vtanh.f32 %v651_v45  ;;  %v638_v49 = vadd.f32 %v630_v32, %v538_v48 }
 0x107   : > { %v654_v50 = vadd.f32 %v1193_v33, %v639_v47 }
 0x108   : > { %v653_v51 = vadd.f32 %v1193_v33, %v638_v49  ;;  %v1235_v52 = vpop.f32.mrb[6].mxu0 }
 0x109   : > { %1312 = vtanh.f32 %v654_v50  ;;  %v641_v53 = vadd.f32 %v1235_v52, %v630_v32  ;;  %v548_v54 = vpop.f32.mrb[7].mxu0 }
 0x10a   : > { %1314 = vtanh.f32 %v653_v51  ;;  %v640_v56 = vadd.f32 %v630_v32, %v548_v54  ;;  %v1389_v54 = vmov 1966171168  }
 0x10b   : > { %v656_v58 = vadd.f32 %v1193_v33, %v641_v53 }
 0x10c   : > { %v655_v60 = vadd.f32 %v1193_v33, %v640_v56  ;;  %v793_v56 = vld [vmem:[%s407_s18] sm:$0x1] }
 0x10d   : > { %v1305_v57 = vpop.eup %1304  ;;  %1316 = vtanh.f32 %v656_v58 }
 0x10e   : > { %v1307_v59 = vpop.eup %1306  ;;  %v673_v61 = vmul.f32 %v1305_v57, %v1194_v55  ;;  %1318 = vtanh.f32 %v655_v60  ;;  %v794_v57 = vld [vmem:[%s407_s18 + $0x1] sm:$0x1]  ;;  %v796_v60 = vld [vmem:[%s407_s18 + $0x3] sm:$0x1] }
 0x10f   : > { %v672_v63 = vmul.f32 %v1307_v59, %v1194_v55  ;;  %v1309_v0 = vpop.eup %1308  ;;  %v795_v59 = vld [vmem:[%s407_s18 + $0x2] sm:$0x1] }
 0x110   : > { %v683_v62 = vsel %vm427_vm1, %v673_v61, 0.0  ;;  %v1311_v1 = vpop.eup %1310  ;;  %v675_v2 = vmul.f32 %v1309_v0, %v1194_v55  ;;  %v797_v61 = vld [vmem:[%s407_s18 + $0x4] sm:$0x1]  ;;  %v800_v0 = vld [vmem:[%s407_s18 + $0x7] sm:$0x1] }
 0x111   : > { %684 = vadd.xlane.f32.xlu0 %v683_v62  ;;  %v680_v3 = vsel %vm427_vm1, %v672_v63, 0.0  ;;  %v674_v5 = vmul.f32 %v1311_v1, %v1194_v55  ;;  %v798_v62 = vld [vmem:[%s407_s18 + $0x5] sm:$0x1]  ;;  %v799_v63 = vld [vmem:[%s407_s18 + $0x6] sm:$0x1]  ;;  %s1390_s18 = smov [#allocation3]  }
 0x112   : > { %v689_v4 = vsel %vm427_vm1, %v675_v2, 0.0  ;;  %v809_v2 = vcombine.low %v793_v56, %v794_v57  ;;  %v942_v56 = vsub.s32 6, %v1573_v22  ;;  %v949_v57 = vsub.s32 7, %v1573_v22  ;;  %s1326_s19 = sshll.u32 %s1390_s18, 4  ;;  %s1327_s19 = int_to_ptr.vmem [resolvable:$false] %s1326_s19 }
 0x113   : > { %v1313_v6 = vpop.eup %1312  ;;  %690 = vadd.xlane.f32.xlu1 %v689_v4  ;;  %v686_v9 = vsel %vm427_vm1, %v674_v5, 0.0  ;;  %v811_v4 = vcombine.low %v797_v61, %v798_v62  ;;  %v812_v5 = vcombine.low %v799_v63, %v800_v0  ;;  %s1328_s20 = scalar_lea.vmem %s1327_s19, 256  ;;  %p1329_p4 = scmp.lt.s32.totalorder %s1627_s25, %s1327_s19 }
 0x114   : > { %v1315_v7 = vpop.eup %1314  ;;  %v677_v10 = vmul.f32 %v1313_v6, %v1194_v55  ;;  %p1330_p5 = scmp.lt.s32.totalorder %s1328_s20, %s1322_s9 }
 0x115   : > { %681 = vadd.xlane.f32.xlu0 %v680_v3  ;;  %v676_v8 = vmul.f32 %v1315_v7, %v1194_v55  ;;  %v810_v3 = vcombine.low %v795_v59, %v796_v60 }
 0x116   : > { %v695_v15 = vsel %vm427_vm1, %v677_v10, 0.0  ;;  %p1331_p7 = por %p1330_p5, %p1329_p4 }
 0x117   : > { %v1317_v11 = vpop.eup %1316  ;;  %687 = vadd.xlane.f32.xlu1 %v686_v9  ;;  %v692_v12 = vsel %vm427_vm1, %v676_v8, 0.0 }
 0x118   : > { %v1319_v13 = vpop.eup %1318  ;;  %v679_v16 = vmul.f32 %v1317_v11, %v1194_v55  ;;  %p1332_p10 = pnand %p1331_p7, %p1325_p3 }
 0x119   : > { %693 = vadd.xlane.f32.xlu0 %v692_v12  ;;  %v678_v14 = vmul.f32 %v1319_v13, %v1194_v55  ;;  %v814_v55 = vunpack.c.l.s4 %v1389_v54 }
 0x11a   : > { %v701_v18 = vsel %vm427_vm1, %v679_v16, 0.0 }
 0x11b   : > { %696 = vadd.xlane.f32.xlu1 %v695_v15  ;;  %v698_v17 = vsel %vm427_vm1, %v678_v14, 0.0  ;;  %v815_v58 = vunpack.c.0.s8 %v814_v55 }
 0x11d   : > { %699 = vadd.xlane.f32.xlu0 %v698_v17  ;;  %v818_v1 = vsub.s32 %v815_v58, %v1573_v22 }
 0x11f   : > { %702 = vadd.xlane.f32.xlu1 %v701_v18  ;;  %v819_v6 = vrot.slane %v809_v2, %v818_v1  ;;  %v826_v7 = vrot.slane %v810_v3, %v818_v1  ;;  %v833_v8 = vrot.slane %v811_v4, %v818_v1  ;;  %v840_v9 = vrot.slane %v812_v5, %v818_v1 }
 0x121   : > { %v841_v10 = vcombine.low %v819_v6, %v826_v7  ;;  %v842_v11 = vcombine.low %v833_v8, %v840_v9 }
 0x123   : > { %v849_v12 = vrot.slane %v841_v10, %v818_v1  ;;  %v856_v13 = vrot.slane %v842_v11, %v818_v1 }
 0x125   : > { %v857_v14 = vcombine.low %v849_v12, %v856_v13 }
 0x19e   : > { %v685_v24 = vpop.xlane.xlu0 %684 }
 0x19f   : > { %v721_v35 = vrot.slane %v685_v24, %v716_v31 }
 0x1a0   : > { %v691_v33 = vpop.xlane.xlu1 %690 }
 0x1a1   : > { %v729_v40 = vrot.slane %v691_v33, %v716_v31 }
 0x1a2   : > { %v682_v32 = vpop.xlane.xlu0 %681 }
 0x1a3   : > { %v717_v34 = vrot.slane %v682_v32, %v716_v31 }
 0x1a4   : > { %v688_v36 = vpop.xlane.xlu1 %687 }
 0x1a5   : > { %v725_v37 = vrot.slane %v688_v36, %v716_v31  ;;  %v747_v39 = vsel %vm746_vm2, %v721_v35, %v717_v34 }
 0x1a6   : > { %v694_v38 = vpop.xlane.xlu0 %693 }
 0x1a7   : > { %v733_v41 = vrot.slane %v694_v38, %v716_v31  ;;  %v749_v42 = vsel %vm748_vm3, %v725_v37, %v747_v39 }
 0x1a8   : > { %v751_v43 = vsel %vm750_vm4, %v729_v40, %v749_v42  ;;  %v697_v44 = vpop.xlane.xlu1 %696 }
 0x1a9   : > { %v753_v45 = vsel %vm752_vm5, %v733_v41, %v751_v43  ;;  %v737_v46 = vrot.slane %v697_v44, %v716_v31  ;;  %v907_v43 = vsub.s32 1, %v1573_v22  ;;  %v900_v44 = vsub.s32 0, %v1573_v22 }
 0x1aa   : > { %v700_v47 = vpop.xlane.xlu0 %699 }
 0x1ab   : > { %v741_v48 = vrot.slane %v700_v47, %v716_v31  ;;  %v755_v49 = vsel %vm754_vm6, %v737_v46, %v753_v45 }
 0x1ac   : > { %v703_v50 = vpop.xlane.xlu1 %702 }
 0x1ad   : > { %v745_v51 = vrot.slane %v703_v50, %v716_v31  ;;  %v757_v52 = vsel %vm756_vm7, %v741_v48, %v755_v49  ;;  %v914_v48 = vsub.s32 2, %v1573_v22  ;;  %v921_v49 = vsub.s32 3, %v1573_v22 }
 0x1af   : > { %v759_v53 = vsel %vm758_vm8, %v745_v51, %v757_v52  ;;  %v928_v52 = vsub.s32 4, %v1573_v22 }
 0x1b0   : > { %761 = vxpose.xlu0.b32.start.end [1/1] (short) (narrow) %v759_v53, 8  ;;  %v935_v53 = vsub.s32 5, %v1573_v22 }
 0x230   : > { %v777_v15 = vpop.trf.xlu0 }
 0x231   : > { %v859_v16 = vmul.f32 %v857_v14, %v777_v15 }
 0x233   : > { %v861_v17 = vsel %vm860_vm9, %v859_v16, 0.0 }
 0x234   : > { %862 = vadd.xlane.f32.xlu1 %v861_v17 }
 0x2c1   : > { %v863_v18 = vpop.xlane.xlu1 %862 }
 0x2c2   : > { %1320 = vrcp.f32 %v863_v18 }
 0x2cc   : > { %v1321_v19 = vpop.eup %1320 }
 0x2cd   : > { %v865_v20 = vmul.f32 %v1321_v19, %v859_v16 }
 0x2cf   : > { %866 = vxpose.xlu1.b32.start.end [1/1] (short) (narrow) %v865_v20, 8  ;;  %v979_v24 = vcombine.high %v865_v20, %v865_v20  ;;  %v986_v31 = vrot.slane %v865_v20, %v818_v1 }
 0x2d1   : > { %v993_v32 = vrot.slane %v979_v24, %v818_v1  ;;  %v994_v33 = vcombine.high %v986_v31, %v986_v31  ;;  %v1002_v34 = vrot.slane %v986_v31, %v818_v1 }
 0x2d3   : > { %v995_v35 = vcombine.high %v993_v32, %v993_v32  ;;  %v1009_v36 = vrot.slane %v993_v32, %v818_v1  ;;  %v1016_v37 = vrot.slane %v994_v33, %v818_v1  ;;  %v1024_v38 = vcombine.high %v1002_v34, %v1002_v34  ;;  %1037 = vst.msk [vmem:[%s412_s21] sm:$0x1] %vm1036_vm10, %v1002_v34 }
 0x2d5   : > { %v1023_v39 = vrot.slane %v995_v35, %v818_v1  ;;  %v1025_v40 = vcombine.high %v1009_v36, %v1009_v36  ;;  %v1026_v41 = vcombine.high %v1016_v37, %v1016_v37  ;;  %1038 = vst.msk [vmem:[%s412_s21 + $0x1] sm:$0x1] %vm1036_vm10, %v1016_v37  ;;  %1039 = vst.msk [vmem:[%s412_s21 + $0x2] sm:$0x1] %vm1036_vm10, %v1024_v38 }
 0x2d6   : > { %1041 = vst.msk [vmem:[%s412_s21 + $0x4] sm:$0x1] %vm1036_vm10, %v1009_v36 }
 0x2d7   : > { %v1027_v42 = vcombine.high %v1023_v39, %v1023_v39  ;;  %1040 = vst.msk [vmem:[%s412_s21 + $0x3] sm:$0x1] %vm1036_vm10, %v1026_v41  ;;  %1042 = vst.msk [vmem:[%s412_s21 + $0x5] sm:$0x1] %vm1036_vm10, %v1023_v39 }
 0x2d8   : > { %1043 = vst.msk [vmem:[%s412_s21 + $0x6] sm:$0x1] %vm1036_vm10, %v1025_v40 }
 0x2d9   : > { %1044 = vst.msk [vmem:[%s412_s21 + $0x7] sm:$0x1] %vm1036_vm10, %v1027_v42 }
 0x34f   : > { %v882_v45 = vpop.trf.xlu1 }
 0x350   : > { %v908_v46 = vrot.slane %v882_v45, %v907_v43  ;;  %v901_v47 = vrot.slane %v882_v45, %v900_v44  ;;  %v915_v50 = vrot.slane %v882_v45, %v914_v48  ;;  %v922_v51 = vrot.slane %v882_v45, %v921_v49 }
 0x351   : > { %v929_v54 = vrot.slane %v882_v45, %v928_v52  ;;  %v936_v55 = vrot.slane %v882_v45, %v935_v53  ;;  %v943_v58 = vrot.slane %v882_v45, %v942_v56  ;;  %v950_v59 = vrot.slane %v882_v45, %v949_v57 }
 0x352   : > { %910 = vbcast.lane.b32.xlu1 %v908_v46, 256  ;;  %903 = vbcast.lane.b32.xlu0 %v901_v47, 256 }
 0x356   : > { %917 = vbcast.lane.b32.xlu1 %v915_v50, 256  ;;  %924 = vbcast.lane.b32.xlu0 %v922_v51, 256 }
 0x35a   : > { %931 = vbcast.lane.b32.xlu1 %v929_v54, 256  ;;  %938 = vbcast.lane.b32.xlu0 %v936_v55, 256 }
 0x35e   : > { %945 = vbcast.lane.b32.xlu1 %v943_v58, 256  ;;  %952 = vbcast.lane.b32.xlu0 %v950_v59, 256 }
 0x3c4   : > { %v911_v60 = vpop.permute.xlu1 %910  ;;  %v904_v61 = vpop.permute.xlu0 %903 }
 0x3c5   : > { %v955_v62 = vmul.f32 %v911_v60, %v1530_v23  ;;  %v954_v63 = vmul.f32 %v904_v61, %v1522_v21 }
 0x3c7   : > { %v963_v0 = vsel %vm427_vm1, %v955_v62, 0.0  ;;  %v962_v1 = vsel %vm427_vm1, %v954_v63, 0.0 }
 0x3c8   : > { %v918_v2 = vpop.permute.xlu1 %917  ;;  %v925_v3 = vpop.permute.xlu0 %924  ;;  %v964_v5 = vadd.f32 %v963_v0, %v962_v1 }
 0x3c9   : > { %v956_v22 = vmul.f32 %v918_v2, %v1532_v25  ;;  %v957_v4 = vmul.f32 %v925_v3, %v1539_v26 }
 0x3cb   : > { %v965_v6 = vsel %vm427_vm1, %v956_v22, 0.0  ;;  %v967_v9 = vsel %vm427_vm1, %v957_v4, 0.0 }
 0x3cc   : > { %v966_v7 = vadd.f32 %v965_v6, %v964_v5  ;;  %v932_v8 = vpop.permute.xlu1 %931  ;;  %v939_v23 = vpop.permute.xlu0 %938 }
 0x3cd   : > { %v958_v21 = vmul.f32 %v932_v8, %v1541_v27  ;;  %v959_v10 = vmul.f32 %v939_v23, %v1547_v28 }
 0x3ce   : > { %v968_v11 = vadd.f32 %v967_v9, %v966_v7 }
 0x3cf   : > { %v969_v12 = vsel %vm427_vm1, %v958_v21, 0.0  ;;  %v971_v14 = vsel %vm427_vm1, %v959_v10, 0.0 }
 0x3d0   : > { %v970_v25 = vadd.f32 %v969_v12, %v968_v11  ;;  %v946_v13 = vpop.permute.xlu1 %945  ;;  %v953_v26 = vpop.permute.xlu0 %952 }
 0x3d1   : > { %v960_v15 = vmul.f32 %v946_v13, %v1549_v29  ;;  %v961_v16 = vmul.f32 %v953_v26, %v1555_v30 }
 0x3d2   : > { %v972_v17 = vadd.f32 %v971_v14, %v970_v25 }
 0x3d3   : > { %v973_v27 = vsel %vm427_vm1, %v960_v15, 0.0  ;;  %v975_v18 = vsel %vm427_vm1, %v961_v16, 0.0 }
 0x3d4   : > { %v974_v28 = vadd.f32 %v973_v27, %v972_v17 }
 0x3d6   : > { %v976_v19 = vadd.f32 %v975_v18, %v974_v28 }
 0x3d8   : > { %977 = vst.msk [vmem:[%s393_s24] sm:$0xff] %vm427_vm1, %v976_v19 }
 0x3d9   : > { %1335 = shalt.err (!%p1332_p10)
}
 0x3da   : > { %s1336_s17 = scalar_lea.hbm %s1625_s12, 128  ;;  %s1340_s23 = scalar_lea.hbm %s1677_s7, 256 }
 0x3db   : > { %p1337_p11 = scmp.ne.s32.totalorder %s1625_s12, %s1336_s17  ;;  %p1341_p0 = scmp.lt.u32.totalorder %s1625_s12, %s1677_s7 }
 0x3dc   : > { %p1342_p1 = scmp.lt.u32.totalorder %s1340_s23, %s1336_s17  ;;  %p1344_p3 = scmp.lt.u32.totalorder %s1336_s17, %s1625_s12 }
 0x3dd   : > { %p1338_p12 = pnand %p1337_p11, %p1475_p6 }
 0x3de   : > { %p1343_p2 = por %p1342_p1, %p1341_p0 }
 0x3df   : > { %p1339_p13 = pneg %p1338_p12 }
 0x3e0   : > { %p1345_p4 = por %p1344_p3, %p1343_p2 }
 0x3e2   : > { %p1346_p5 = pnand %p1345_p4, %p1339_p13 }
 0x3e4   : > { %1349 = shalt.err (!%p1346_p5)
}
 0x3e5   : > { %1261 = dma.vmem_to_hbm [thread:$0]  (%p1475_p6), %s1627_s25, 128, %s1625_s12, %s1046_s13  }
 0x3e6 PF: > { %s1079_s10 = sand.u32 1, %s1372_s27   ;;  %p1264_p7 = pnand %p1175_p9, %p1479_p8 }
 0x3e7   : > { %s1080_s9 = scalar_lea.sflag [#allocation4], %s1079_s10 }
 0x3e8   : > { %1367 = dma.done.wait (!%p1264_p7), %s1080_s9, 128  }
 0x3e9   : > { %1369 = vsyncadd (!%p1264_p7), %s1080_s9, 4294967168  ;;  %p19_p10 = scmp.ge.s32.totalorder %s1461_s11, 4   ;;  %s1681_s27 = smov %s1376_s28 }
 0x3ea   : > { %s1682_s28 = smov %s1380_s29  ;;  %s1683_s29 = smov %s1473_s14 }
 0x3eb   : > { %s1684_s30 = smov %s1461_s11  ;;  %21 = sbr.rel (!%p19_p10) target bundleno = 3 (0x3), region = 144 }
 0x3f2   :  { %1092 = vsyncpa [#allocation4], 1 }
 0x3f3   :  { %1094 = vsyncpa [#allocation4 + $0x1], 1 }

</bundles_post_ra>
